<compile_context>
chip_gen: v5e
topology: v5e:2x2
jax: 0.10.0
libtpu: 0.0.40
codegen_flags: <defaults>
</compile_context>

<pallas_src>
import functools

import jax
import jax.numpy as jnp
from jax.experimental import pallas as pl
from jax.experimental.pallas import tpu as pltpu


def _round_up(x, m):
    return ((x + m - 1) // m) * m


def _pick_tile(dim_pad, candidates=(512, 256, 128)):
    for cand in candidates:
        if dim_pad % cand == 0:
            return cand
    return 128


# ---------------------------------------------------------------------------
# Kernel 1: per-out-channel weight quantization (runs ONCE, outside hot loop).
#   w_t: (K_pad, O_pad) with the out-channel on the lane axis.
#   scale/inv_scale/lo/hi: (1, O_pad) rows, precomputed in the wrapper.
# ---------------------------------------------------------------------------
def _quantize_weight_kernel(w_ref, scale_ref, inv_scale_ref, lo_ref, hi_ref,
                            cw_ref):
    w = w_ref[...]
    wq = scale_ref[...] * jnp.minimum(
        jnp.maximum(inv_scale_ref[...] * w, lo_ref[...]), hi_ref[...])
    # compressed_weight = wq + (wq - round(wq)).detach()  (forward value only;
    # jnp.round is round-half-to-even, matching torch.round)
    cw_ref[...] = wq + (wq - jnp.round(wq))


def _quantize_weight(w_t, scale_row, inv_scale_row, lo_row, hi_row):
    kp, op = w_t.shape
    full_spec = pl.BlockSpec((kp, op), lambda i: (0, 0))
    row_spec = pl.BlockSpec((1, op), lambda i: (0, 0))
    return pl.pallas_call(
        _quantize_weight_kernel,
        out_shape=jax.ShapeDtypeStruct((kp, op), jnp.float32),
        grid=(1,),
        in_specs=[full_spec, row_spec, row_spec, row_spec, row_spec],
        out_specs=full_spec,
    )(w_t, scale_row, inv_scale_row, lo_row, hi_row)


# ---------------------------------------------------------------------------
# Kernel 2: tiled im2col matmul   out[M, O] = patches[M, K] @ cw[K, O] + bias
#   grid = (M tiles [parallel], O tiles [parallel], K tiles [arbitrary, last])
# ---------------------------------------------------------------------------
def _conv_matmul_kernel(p_ref, w_ref, bias_ref, out_ref, acc_ref):
    kk = pl.program_id(2)

    @pl.when(kk == 0)
    def _init():
        acc_ref[...] = jnp.zeros_like(acc_ref)

    # NOTE: if accuracy budget allows, cast p_ref/w_ref to bf16 here for the
    # full bf16 MXU rate on v6e/v7x (accumulation stays f32).
    acc_ref[...] += jnp.dot(p_ref[...], w_ref[...],
                            preferred_element_type=jnp.float32)

    @pl.when(kk == pl.num_programs(2) - 1)
    def _finalize():
        out_ref[...] = (acc_ref[...] + bias_ref[...]).astype(out_ref.dtype)


def _im2col_nchw(x, k, stride, padding):
    """x: (N, C, H, W) -> patches (N*Ho*Wo, C*k*k), K ordered (C, kh, kw)."""
    n, c, h, w = x.shape
    if padding:
        x = jnp.pad(x, ((0, 0), (0, 0), (padding, padding), (padding, padding)))
    ho = (h + 2 * padding - k) // stride + 1
    wo = (w + 2 * padding - k) // stride + 1
    cols = []
    for kh in range(k):
        for kw in range(k):
            cols.append(
                x[:, :, kh:kh + stride * ho:stride, kw:kw + stride * wo:stride])
    p = jnp.stack(cols, axis=2)                      # (N, C, k*k, Ho, Wo)
    p = p.reshape(n, c * k * k, ho, wo)              # K index = c*(k*k)+kh*k+kw
    p = p.transpose(0, 2, 3, 1).reshape(n * ho * wo, c * k * k)
    return p, ho, wo


@functools.partial(jax.jit, static_argnames=("stride", "padding"))
def compression_conv_forward(x, weight, bias, bit_depth, floating_point_exp,
                             stride=1, padding=0):
    n, c, h, w = x.shape
    o, ci, kh, kw = weight.shape
    assert ci == c and kh == kw
    k = kh

    patches, ho, wo = _im2col_nchw(x.astype(jnp.float32), k, stride, padding)
    m_dim = n * ho * wo
    k_dim = c * k * k

    # ---- padding / tiling choices ------------------------------------------
    o_pad = _round_up(o, 128)                 # lane-dense output (unmasked vst)
    k_pad = _round_up(k_dim, 128)
    tile_k = _pick_tile(k_pad)
    tile_o = _pick_tile(o_pad)
    tile_m = min(512, _round_up(m_dim, 8))    # M tile sized well under VMEM
    m_pad = _round_up(m_dim, tile_m)

    # ---- operand layout -----------------------------------------------------
    # patches: (M_pad, K_pad), zero-padded (padded K cols multiply 0 -> safe)
    patches = jnp.pad(patches, ((0, m_pad - m_dim), (0, k_pad - k_dim)))
    # weight pre-transposed to (K_pad, O_pad); padded entries are 0
    w2d = weight.reshape(o, k_dim).astype(jnp.float32)
    w_t = jnp.pad(w2d, ((0, o_pad - o), (0, k_pad - k_dim))).T

    # Per-out-channel quantization params -> precompute transcendentals on
    # tiny (O,) vectors OUTSIDE the kernel; pad so q(0) == 0 for pad channels.
    b_vec = jnp.pad(bit_depth.reshape(o).astype(jnp.float32),
                    (0, o_pad - o), constant_values=2.0)
    e_vec = jnp.pad(floating_point_exp.reshape(o).astype(jnp.float32),
                    (0, o_pad - o), constant_values=0.0)
    scale_row = jnp.exp2(e_vec).reshape(1, o_pad)
    inv_scale_row = jnp.exp2(-e_vec).reshape(1, o_pad)
    pow_b = jnp.exp2(b_vec - 1.0)
    lo_row = (-pow_b).reshape(1, o_pad)
    hi_row = (pow_b - 1.0).reshape(1, o_pad)
    bias_row = jnp.pad(bias.astype(jnp.float32), (0, o_pad - o)).reshape(1, o_pad)

    # ---- 1) quantize weights once (hoisted out of the conv loop) ------------
    cw = _quantize_weight(w_t, scale_row, inv_scale_row, lo_row, hi_row)

    # ---- 2) tiled matmul + bias ---------------------------------------------
    grid = (m_pad // tile_m, o_pad // tile_o, k_pad // tile_k)
    cost = pl.CostEstimate(
        flops=2 * m_pad * k_pad * o_pad,
        transcendentals=0,
        bytes_accessed=4 * (m_pad * k_pad + k_pad * o_pad + m_pad * o_pad),
    )
    out_flat = pl.pallas_call(
        _conv_matmul_kernel,
        out_shape=jax.ShapeDtypeStruct((m_pad, o_pad), jnp.float32),
        grid_spec=pltpu.PrefetchScalarGridSpec(
            num_scalar_prefetch=0,
            grid=grid,
            in_specs=[
                pl.BlockSpec((tile_m, tile_k), lambda i, j, kk: (i, kk)),
                pl.BlockSpec((tile_k, tile_o), lambda i, j, kk: (kk, j)),
                pl.BlockSpec((1, tile_o), lambda i, j, kk: (0, j)),
            ],
            out_specs=pl.BlockSpec((tile_m, tile_o), lambda i, j, kk: (i, j)),
            scratch_shapes=[pltpu.VMEM((tile_m, tile_o), jnp.float32)],
        ),
        compiler_params=pltpu.CompilerParams(
            dimension_semantics=("parallel", "parallel", "arbitrary"),
            vmem_limit_bytes=32 * 1024 * 1024,   # explicit, fits v7x (64 MiB phys)
        ),
        cost_estimate=cost,
    )(patches, cw, bias_row)

    # strip padding; (N*Ho*Wo, O) -> (N, O, Ho, Wo) to match PyTorch NCHW output
    out = out_flat[:m_dim, :o].reshape(n, ho, wo, o).transpose(0, 3, 1, 2)
    return out


def _reference_forward(x, weight, bias, bit_depth, floating_point_exp,
                       stride=1, padding=0):
    """Pure-JAX reference mirroring the PyTorch forward."""
    b = bit_depth.astype(jnp.float32)
    e = floating_point_exp.astype(jnp.float32)
    wq = jnp.exp2(e) * jnp.minimum(
        jnp.maximum(jnp.exp2(-e) * weight, -jnp.exp2(b - 1.0)),
        jnp.exp2(b - 1.0) - 1.0)
    cw = wq + (wq - jnp.round(wq))
    out = jax.lax.conv_general_dilated(
        x.astype(jnp.float32), cw.astype(jnp.float32),
        window_strides=(stride, stride),
        padding=[(padding, padding), (padding, padding)],
        dimension_numbers=("NCHW", "OIHW", "NCHW"))
    return out + bias.reshape(1, -1, 1, 1)


if __name__ == "__main__":
    # Module hyper-parameters (small, consistent with the PyTorch module)
    in_channels, out_channels = 4, 8
    kernel_size, stride, padding = 3, 1, 0
    N, H, W = 2, 16, 16

    key = jax.random.PRNGKey(0)
    kx, kw_, kb = jax.random.split(key, 3)

    x = jax.random.normal(kx, (N, in_channels, H, W), dtype=jnp.float32)
    weight = jax.random.normal(
        kw_, (out_channels, in_channels, kernel_size, kernel_size),
        dtype=jnp.float32)
    bias = jax.random.normal(kb, (out_channels,), dtype=jnp.float32)
    bit_depth = jnp.full((out_channels, 1, 1, 1), 2.0, dtype=jnp.float32)
    floating_point_exp = jnp.full((out_channels, 1, 1, 1), -8.0, dtype=jnp.float32)

    out = compression_conv_forward(
        x, weight, bias, bit_depth, floating_point_exp,
        stride=stride, padding=padding)
    out = jax.block_until_ready(out)

    ref = _reference_forward(
        x, weight, bias, bit_depth, floating_point_exp,
        stride=stride, padding=padding)

    assert out.shape == (N, out_channels, H - kernel_size + 1, W - kernel_size + 1)
    assert jnp.allclose(out, ref, atol=1e-4, rtol=1e-4), "mismatch vs reference"
    print("KERNEL_OK")
</pallas_src>

<mosaic_0001>
module attributes {stable_mosaic.version = 11 : i64} {
  func.func @_quantize_weight_kernel(%arg0: i32, %arg1: memref<128x128xf32, #tpu.memory_space<vmem>>, %arg2: memref<1x128xf32, #tpu.memory_space<vmem>>, %arg3: memref<1x128xf32, #tpu.memory_space<vmem>>, %arg4: memref<1x128xf32, #tpu.memory_space<vmem>>, %arg5: memref<1x128xf32, #tpu.memory_space<vmem>>, %arg6: memref<128x128xf32, #tpu.memory_space<vmem>>) attributes {dimension_semantics = [#tpu.dimension_semantics<arbitrary>], iteration_bounds = array<i64: 1>, scalar_prefetch = 0 : i64, scratch_operands = 0 : i64, tpu.core_type = #tpu.core_type<tc>, window_params = [{pipeline_mode = #tpu.pipeline_mode<synchronous>, transform_indices = @transform_0, window_bounds = array<i64: 128, 128>}, {pipeline_mode = #tpu.pipeline_mode<synchronous>, transform_indices = @transform_1, window_bounds = array<i64: 1, 128>}, {pipeline_mode = #tpu.pipeline_mode<synchronous>, transform_indices = @transform_2, window_bounds = array<i64: 1, 128>}, {pipeline_mode = #tpu.pipeline_mode<synchronous>, transform_indices = @transform_3, window_bounds = array<i64: 1, 128>}, {pipeline_mode = #tpu.pipeline_mode<synchronous>, transform_indices = @transform_4, window_bounds = array<i64: 1, 128>}, {pipeline_mode = #tpu.pipeline_mode<synchronous>, transform_indices = @transform_5, window_bounds = array<i64: 128, 128>}]} {
    %c0 = arith.constant 0 : index
    %c0_0 = arith.constant 0 : index
    %0 = vector.load %arg1[%c0, %c0_0] : memref<128x128xf32, #tpu.memory_space<vmem>>, vector<128x128xf32>
    %c0_1 = arith.constant 0 : index
    %c0_2 = arith.constant 0 : index
    %1 = vector.load %arg2[%c0_1, %c0_2] : memref<1x128xf32, #tpu.memory_space<vmem>>, vector<1x128xf32>
    %c0_3 = arith.constant 0 : index
    %c0_4 = arith.constant 0 : index
    %2 = vector.load %arg3[%c0_3, %c0_4] : memref<1x128xf32, #tpu.memory_space<vmem>>, vector<1x128xf32>
    %3 = vector.broadcast %2 : vector<1x128xf32> to vector<128x128xf32>
    %4 = arith.mulf %3, %0 : vector<128x128xf32>
    %c0_5 = arith.constant 0 : index
    %c0_6 = arith.constant 0 : index
    %5 = vector.load %arg4[%c0_5, %c0_6] : memref<1x128xf32, #tpu.memory_space<vmem>>, vector<1x128xf32>
    %6 = vector.broadcast %5 : vector<1x128xf32> to vector<128x128xf32>
    %7 = arith.maximumf %4, %6 : vector<128x128xf32>
    %c0_7 = arith.constant 0 : index
    %c0_8 = arith.constant 0 : index
    %8 = vector.load %arg5[%c0_7, %c0_8] : memref<1x128xf32, #tpu.memory_space<vmem>>, vector<1x128xf32>
    %9 = vector.broadcast %8 : vector<1x128xf32> to vector<128x128xf32>
    %10 = arith.minimumf %7, %9 : vector<128x128xf32>
    %11 = vector.broadcast %1 : vector<1x128xf32> to vector<128x128xf32>
    %12 = arith.mulf %11, %10 : vector<128x128xf32>
    %13 = math.roundeven %12 : vector<128x128xf32>
    %14 = arith.subf %12, %13 : vector<128x128xf32>
    %15 = arith.addf %12, %14 : vector<128x128xf32>
    %c0_9 = arith.constant 0 : index
    %c0_10 = arith.constant 0 : index
    %16 = vector.load %arg6[%c0_9, %c0_10] : memref<128x128xf32, #tpu.memory_space<vmem>>, vector<128x128xf32>
    tpu.vector_store %arg6[%c0_9, %c0_10], %15 {strides = array<i32>} : memref<128x128xf32, #tpu.memory_space<vmem>>, vector<128x128xf32>,
    return
  }
  func.func @transform_0(%arg0: i32) -> (i32, i32) {
    %c0_i32 = arith.constant 0 : i32
    %c0_i32_0 = arith.constant 0 : i32
    %c0_i32_1 = arith.constant 0 : i32
    return %c0_i32, %c0_i32_0 : i32, i32
  }
  func.func @transform_1(%arg0: i32) -> (i32, i32) {
    %c0_i32 = arith.constant 0 : i32
    %c0_i32_0 = arith.constant 0 : i32
    %c0_i32_1 = arith.constant 0 : i32
    return %c0_i32, %c0_i32_0 : i32, i32
  }
  func.func @transform_2(%arg0: i32) -> (i32, i32) {
    %c0_i32 = arith.constant 0 : i32
    %c0_i32_0 = arith.constant 0 : i32
    %c0_i32_1 = arith.constant 0 : i32
    return %c0_i32, %c0_i32_0 : i32, i32
  }
  func.func @transform_3(%arg0: i32) -> (i32, i32) {
    %c0_i32 = arith.constant 0 : i32
    %c0_i32_0 = arith.constant 0 : i32
    %c0_i32_1 = arith.constant 0 : i32
    return %c0_i32, %c0_i32_0 : i32, i32
  }
  func.func @transform_4(%arg0: i32) -> (i32, i32) {
    %c0_i32 = arith.constant 0 : i32
    %c0_i32_0 = arith.constant 0 : i32
    %c0_i32_1 = arith.constant 0 : i32
    return %c0_i32, %c0_i32_0 : i32, i32
  }
  func.func @transform_5(%arg0: i32) -> (i32, i32) {
    %c0_i32 = arith.constant 0 : i32
    %c0_i32_0 = arith.constant 0 : i32
    %c0_i32_1 = arith.constant 0 : i32
    return %c0_i32, %c0_i32_0 : i32, i32
  }
}

module attributes {stable_mosaic.version = 11 : i64} {
  func.func @_conv_matmul_kernel(%arg0: i32, %arg1: i32, %arg2: i32, %arg3: memref<392x128xf32, #tpu.memory_space<vmem>>, %arg4: memref<128x128xf32, #tpu.memory_space<vmem>>, %arg5: memref<1x128xf32, #tpu.memory_space<vmem>>, %arg6: memref<392x128xf32, #tpu.memory_space<vmem>>, %arg7: memref<392x128xf32, #tpu.memory_space<vmem>>) attributes {dimension_semantics = [#tpu.dimension_semantics<parallel>, #tpu.dimension_semantics<parallel>, #tpu.dimension_semantics<arbitrary>], iteration_bounds = array<i64: 1, 1, 1>, scalar_prefetch = 0 : i64, scratch_operands = 1 : i64, tpu.core_type = #tpu.core_type<tc>, window_params = [{transform_indices = @transform_0, window_bounds = array<i64: 392, 128>}, {transform_indices = @transform_1, window_bounds = array<i64: 128, 128>}, {transform_indices = @transform_2, window_bounds = array<i64: 1, 128>}, {transform_indices = @transform_3, window_bounds = array<i64: 392, 128>}]} {
    %c0_i32 = arith.constant 0 : i32
    %0 = arith.cmpi eq, %arg2, %c0_i32 : i32
    %1 = arith.extui %0 : i1 to i32
    %c0_i32_0 = arith.constant 0 : i32
    %2 = arith.cmpi ne, %1, %c0_i32_0 : i32
    scf.if %2 {
      %cst_10 = arith.constant 0.000000e+00 : f32
      %12 = vector.broadcast %cst_10 : f32 to vector<392x128xf32>
      %c0_11 = arith.constant 0 : index
      %c0_12 = arith.constant 0 : index
      %13 = vector.load %arg7[%c0_11, %c0_12] : memref<392x128xf32, #tpu.memory_space<vmem>>, vector<392x128xf32>
      tpu.vector_store %arg7[%c0_11, %c0_12], %12 {strides = array<i32>} : memref<392x128xf32, #tpu.memory_space<vmem>>, vector<392x128xf32>,
    } else {
    }
    %c0 = arith.constant 0 : index
    %c0_1 = arith.constant 0 : index
    %3 = vector.load %arg7[%c0, %c0_1] : memref<392x128xf32, #tpu.memory_space<vmem>>, vector<392x128xf32>
    %c0_2 = arith.constant 0 : index
    %c0_3 = arith.constant 0 : index
    %4 = vector.load %arg3[%c0_2, %c0_3] : memref<392x128xf32, #tpu.memory_space<vmem>>, vector<392x128xf32>
    %c0_4 = arith.constant 0 : index
    %c0_5 = arith.constant 0 : index
    %5 = vector.load %arg4[%c0_4, %c0_5] : memref<128x128xf32, #tpu.memory_space<vmem>>, vector<128x128xf32>
    %cst = arith.constant dense<0.000000e+00> : vector<392x128xf32>
    %6 = tpu.matmul %4, %5, %cst {dimension_numbers = #tpu.dot_dimension_numbers<[1], [0], [0], [1], [0, 0, 1, 1], [], []>} : vector<392x128xf32>, vector<128x128xf32>, vector<392x128xf32> -> vector<392x128xf32>
    %7 = arith.addf %3, %6 : vector<392x128xf32>
    %c0_6 = arith.constant 0 : index
    %c0_7 = arith.constant 0 : index
    %8 = vector.load %arg7[%c0_6, %c0_7] : memref<392x128xf32, #tpu.memory_space<vmem>>, vector<392x128xf32>
    tpu.vector_store %arg7[%c0_6, %c0_7], %7 {strides = array<i32>} : memref<392x128xf32, #tpu.memory_space<vmem>>, vector<392x128xf32>,
    %c0_i32_8 = arith.constant 0 : i32
    %9 = arith.cmpi eq, %arg2, %c0_i32_8 : i32
    %10 = arith.extui %9 : i1 to i32
    %c0_i32_9 = arith.constant 0 : i32
    %11 = arith.cmpi ne, %10, %c0_i32_9 : i32
    scf.if %11 {
      %c0_10 = arith.constant 0 : index
      %c0_11 = arith.constant 0 : index
      %12 = vector.load %arg7[%c0_10, %c0_11] : memref<392x128xf32, #tpu.memory_space<vmem>>, vector<392x128xf32>
      %c0_12 = arith.constant 0 : index
      %c0_13 = arith.constant 0 : index
      %13 = vector.load %arg5[%c0_12, %c0_13] : memref<1x128xf32, #tpu.memory_space<vmem>>, vector<1x128xf32>
      %14 = vector.broadcast %13 : vector<1x128xf32> to vector<392x128xf32>
      %15 = arith.addf %12, %14 : vector<392x128xf32>
      %c0_14 = arith.constant 0 : index
      %c0_15 = arith.constant 0 : index
      %16 = vector.load %arg6[%c0_14, %c0_15] : memref<392x128xf32, #tpu.memory_space<vmem>>, vector<392x128xf32>
      tpu.vector_store %arg6[%c0_14, %c0_15], %15 {strides = array<i32>} : memref<392x128xf32, #tpu.memory_space<vmem>>, vector<392x128xf32>,
    } else {
    }
    return
  }
  func.func @transform_0(%arg0: i32, %arg1: i32, %arg2: i32) -> (i32, i32) {
    %c0_i32 = arith.constant 0 : i32
    return %arg0, %arg2 : i32, i32
  }
  func.func @transform_1(%arg0: i32, %arg1: i32, %arg2: i32) -> (i32, i32) {
    %c0_i32 = arith.constant 0 : i32
    return %arg2, %arg1 : i32, i32
  }
  func.func @transform_2(%arg0: i32, %arg1: i32, %arg2: i32) -> (i32, i32) {
    %c0_i32 = arith.constant 0 : i32
    %c0_i32_0 = arith.constant 0 : i32
    return %c0_i32, %arg1 : i32, i32
  }
  func.func @transform_3(%arg0: i32, %arg1: i32, %arg2: i32) -> (i32, i32) {
    %c0_i32 = arith.constant 0 : i32
    return %arg0, %arg1 : i32, i32
  }
}

</mosaic_0001>

<bundles_post_ra>
// kernel: compression_conv_forward.2
= control target key start
LH: loop header
LB: loop body
LE: loop exit
PB: predicated region body
PF: predicated region fallthrough
CT: control target
= control target key end

     0   :  { %s639_s0 = inlined_call_operand.vmem [shape: f32[128,128], index: 0, kind: input, shape index: {}]   ;;  %s640_s1 = inlined_call_operand.vmem [shape: f32[1,128], index: 1, kind: input, shape index: {}]   ;;  %s641_s2 = inlined_call_operand.vmem [shape: f32[1,128], index: 2, kind: input, shape index: {}]   ;;  %s642_s3 = inlined_call_operand.vmem [shape: f32[1,128], index: 3, kind: input, shape index: {}]   ;;  %s643_s4 = inlined_call_operand.vmem [shape: f32[1,128], index: 4, kind: input, shape index: {}]   ;;  %s644_s5 = inlined_call_operand.vmem [shape: f32[128,128], index: 5, kind: output, shape index: {}]  }
   0x1   :  { %v20_v0 = vld [vmem:[%s639_s0] sm:$0xff]  ;;  %v21_v5 = vld [vmem:[%s639_s0 + $0x8] sm:$0xff]  ;;  %v22_v6 = vld [vmem:[%s639_s0 + $0x10] sm:$0xff] }
   0x2   :  { %v352_v1 = vld [vmem:[%s641_s2] ss:$0 sm:$0xff]  ;;  %v23_v7 = vld [vmem:[%s639_s0 + $0x18] sm:$0xff]  ;;  %v25_v12 = vld [vmem:[%s639_s0 + $0x28] sm:$0xff] }
   0x3   :  { %v357_v2 = vld [vmem:[%s642_s3] ss:$0 sm:$0xff]  ;;  %v41_v4 = vmul.f32 %v352_v1, %v20_v0  ;;  %v42_v8 = vmul.f32 %v352_v1, %v21_v5  ;;  %v43_v9 = vmul.f32 %v352_v1, %v22_v6  ;;  %v44_v10 = vmul.f32 %v352_v1, %v23_v7  ;;  %v26_v13 = vld [vmem:[%s639_s0 + $0x30] sm:$0xff]  ;;  %v27_v19 = vld [vmem:[%s639_s0 + $0x38] sm:$0xff] }
   0x4   :  { %v362_v3 = vld [vmem:[%s643_s4] ss:$0 sm:$0xff]  ;;  %v46_v17 = vmul.f32 %v352_v1, %v25_v12  ;;  %v47_v18 = vmul.f32 %v352_v1, %v26_v13  ;;  %v48_v23 = vmul.f32 %v352_v1, %v27_v19 }
   0x5   :  { %v24_v11 = vld [vmem:[%s639_s0 + $0x20] sm:$0xff]  ;;  %v61_v14 = vmax.f32 %v41_v4, %v357_v2  ;;  %v62_v20 = vmax.f32 %v42_v8, %v357_v2  ;;  %v63_v21 = vmax.f32 %v43_v9, %v357_v2  ;;  %v64_v22 = vmax.f32 %v44_v10, %v357_v2 }
   0x6   :  { %v390_v15 = vld [vmem:[%s640_s1] ss:$0 sm:$0xff]  ;;  %v45_v16 = vmul.f32 %v352_v1, %v24_v11  ;;  %v66_v26 = vmax.f32 %v46_v17, %v357_v2  ;;  %v67_v27 = vmax.f32 %v47_v18, %v357_v2  ;;  %v68_v31 = vmax.f32 %v48_v23, %v357_v2 }
   0x7   :  { %v81_v24 = vmin.f32 %v61_v14, %v362_v3  ;;  %v82_v28 = vmin.f32 %v62_v20, %v362_v3  ;;  %v83_v29 = vmin.f32 %v63_v21, %v362_v3  ;;  %v84_v30 = vmin.f32 %v64_v22, %v362_v3 }
   0x8   :  { %v65_v25 = vmax.f32 %v45_v16, %v357_v2  ;;  %v86_v34 = vmin.f32 %v66_v26, %v362_v3  ;;  %v87_v35 = vmin.f32 %v67_v27, %v362_v3  ;;  %v420_v39 = vmin.f32 %v68_v31, %v362_v3 }
   0x9   :  { %v100_v32 = vmul.f32 %v390_v15, %v81_v24  ;;  %v101_v36 = vmul.f32 %v390_v15, %v82_v28  ;;  %v102_v37 = vmul.f32 %v390_v15, %v83_v29  ;;  %v417_v38 = vmul.f32 %v390_v15, %v84_v30 }
   0xa   :  { %v85_v33 = vmin.f32 %v65_v25, %v362_v3  ;;  %v452_v10 = vmul.f32 %v390_v15, %v86_v34  ;;  %v457_v14 = vmul.f32 %v390_v15, %v87_v35 }
   0xb   :  { %v184_v40 = vand.u32 2147483647, %v100_v32  ;;  %v186_v41 = vcvt.f32.s32 %v100_v32  ;;  %v189_v42 = vand.u32 2147483648, %v100_v32  ;;  %v192_v44 = vand.u32 2147483647, %v101_v36 }
   0xc   :  { %v423_v43 = vmul.f32 %v390_v15, %v85_v33  ;;  %v194_v45 = vcvt.f32.s32 %v101_v36  ;;  %v197_v46 = vand.u32 2147483648, %v101_v36  ;;  %v200_v47 = vand.u32 2147483647, %v102_v37  ;;  %v28_v33 = vld [vmem:[%s639_s0 + $0x40] sm:$0xff] }
   0xd   :  { %vm425_vm0 = vcmp.lt.f32.partialorder %v184_v40, 8388608.0  ;;  %v187_v49 = vcvt.s32.f32 %v186_v41  ;;  %v202_v50 = vcvt.f32.s32 %v102_v37  ;;  %v205_v51 = vand.u32 2147483648, %v102_v37  ;;  %v29_v40 = vld [vmem:[%s639_s0 + $0x48] sm:$0xff] }
   0xe   :  { %vm429_vm1 = vcmp.lt.f32.partialorder %v192_v44, 8388608.0  ;;  %v195_v53 = vcvt.s32.f32 %v194_v45  ;;  %vm433_vm2 = vcmp.lt.f32.partialorder %v200_v47, 8388608.0  ;;  %v208_v55 = vand.u32 2147483647, %v417_v38 }
   0xf   :  { %v188_v56 = vand.u32 2147483647, %v187_v49  ;;  %v203_v57 = vcvt.s32.f32 %v202_v50  ;;  %v210_v58 = vcvt.f32.s32 %v417_v38  ;;  %v213_v59 = vand.u32 2147483648, %v417_v38  ;;  %v30_v49 = vld [vmem:[%s639_s0 + $0x50] sm:$0xff] }
  0x10   :  { %v196_v60 = vand.u32 2147483647, %v195_v53  ;;  %vm440_vm3 = vcmp.lt.f32.partialorder %v208_v55, 8388608.0  ;;  %v216_v62 = vand.u32 2147483647, %v423_v43  ;;  %v218_v63 = vcvt.f32.s32 %v423_v43 }
  0x11   :  { %v190_v0 = vor.u32 %v189_v42, %v188_v56  ;;  %v204_v4 = vand.u32 2147483647, %v203_v57  ;;  %v211_v5 = vcvt.s32.f32 %v210_v58  ;;  %v221_v6 = vand.u32 2147483648, %v423_v43  ;;  %v31_v56 = vld [vmem:[%s639_s0 + $0x58] sm:$0xff] }
  0x12   :  { %v198_v7 = vor.u32 %v197_v46, %v196_v60  ;;  %vm447_vm4 = vcmp.lt.f32.partialorder %v216_v62, 8388608.0  ;;  %v219_v9 = vcvt.s32.f32 %v218_v63  ;;  %v224_v19 = vand.u32 2147483647, %v452_v10  ;;  %v32_v60 = vld [vmem:[%s639_s0 + $0x60] sm:$0xff] }
  0x13   :  { %v191_v11 = vsel %vm425_vm0, %v190_v0, %v100_v32  ;;  %v206_v12 = vor.u32 %v205_v51, %v204_v4  ;;  %v212_v13 = vand.u32 2147483647, %v211_v5  ;;  %v226_v23 = vcvt.f32.s32 %v452_v10 }
  0x14   :  { %v132_v16 = vsub.f32 %v100_v32, %v191_v11  ;;  %v199_v17 = vsel %vm429_vm1, %v198_v7, %v101_v36  ;;  %v220_v18 = vand.u32 2147483647, %v219_v9  ;;  %vm465_vm5 = vcmp.lt.f32.partialorder %v224_v19, 8388608.0 }
  0x15   :  { %v133_v20 = vsub.f32 %v101_v36, %v199_v17  ;;  %v207_v21 = vsel %vm433_vm2, %v206_v12, %v102_v37  ;;  %v214_v22 = vor.u32 %v213_v59, %v212_v13  ;;  %v227_v30 = vcvt.s32.f32 %v226_v23 }
  0x16   :  { %v148_v24 = vadd.f32 %v132_v16, %v100_v32  ;;  %v134_v25 = vsub.f32 %v102_v37, %v207_v21  ;;  %v222_v26 = vor.u32 %v221_v6, %v220_v18  ;;  %v229_v31 = vand.u32 2147483648, %v452_v10 }
  0x17   :  { %v149_v28 = vadd.f32 %v133_v20, %v101_v36  ;;  %v215_v29 = vsel %vm440_vm3, %v214_v22, %v417_v38  ;;  %v232_v36 = vand.u32 2147483647, %v457_v14  ;;  %v228_v42 = vand.u32 2147483647, %v227_v30 }
  0x18   :  { %164 = vst [vmem:[%s644_s5] sm:$0xff] %v148_v24  ;;  %v150_v32 = vadd.f32 %v134_v25, %v102_v37  ;;  %v135_v34 = vsub.f32 %v417_v38, %v215_v29  ;;  %v223_v35 = vsel %vm447_vm4, %v222_v26, %v423_v43  ;;  %v234_v37 = vcvt.f32.s32 %v457_v14  ;;  %v33_v25 = vld [vmem:[%s639_s0 + $0x68] sm:$0xff] }
  0x19   :  { %165 = vst [vmem:[%s644_s5 + $0x8] sm:$0xff] %v149_v28  ;;  %v136_v41 = vsub.f32 %v423_v43, %v223_v35  ;;  %v237_v44 = vand.u32 2147483648, %v457_v14  ;;  %vm497_vm6 = vcmp.lt.f32.partialorder %v232_v36, 8388608.0  ;;  %v107_v47 = vmul.f32 %v390_v15, %v420_v39 }
  0x1a   :  { %166 = vst [vmem:[%s644_s5 + $0x10] sm:$0xff] %v150_v32  ;;  %v151_v45 = vadd.f32 %v135_v34, %v417_v38  ;;  %v49_v48 = vmul.f32 %v352_v1, %v28_v33  ;;  %v230_v51 = vor.u32 %v229_v31, %v228_v42  ;;  %v235_v52 = vcvt.s32.f32 %v234_v37 }
  0x1b   :  { %v152_v50 = vadd.f32 %v136_v41, %v423_v43  ;;  %v50_v53 = vmul.f32 %v352_v1, %v29_v40  ;;  %v240_v38 = vand.u32 2147483647, %v107_v47  ;;  %v242_v54 = vcvt.f32.s32 %v107_v47 }
  0x1c   :  { %167 = vst [vmem:[%s644_s5 + $0x18] sm:$0xff] %v151_v45  ;;  %v245_v55 = vand.u32 2147483648, %v107_v47  ;;  %v69_v39 = vmax.f32 %v49_v48, %v357_v2  ;;  %v231_v43 = vsel %vm465_vm5, %v230_v51, %v452_v10  ;;  %v236_v57 = vand.u32 2147483647, %v235_v52 }
  0x1d   :  { %168 = vst [vmem:[%s644_s5 + $0x20] sm:$0xff] %v152_v50  ;;  %v70_v58 = vmax.f32 %v50_v53, %v357_v2  ;;  %v51_v59 = vmul.f32 %v352_v1, %v30_v49  ;;  %v137_v61 = vsub.f32 %v452_v10, %v231_v43  ;;  %vm528_vm7 = vcmp.lt.f32.partialorder %v240_v38, 8388608.0 }
  0x1e   :  { %v243_v63 = vcvt.s32.f32 %v242_v54  ;;  %v89_v0 = vmin.f32 %v69_v39, %v362_v3  ;;  %v238_v4 = vor.u32 %v237_v44, %v236_v57  ;;  %v52_v7 = vmul.f32 %v352_v1, %v31_v56 }
  0x1f   :  { %v90_v5 = vmin.f32 %v70_v58, %v362_v3  ;;  %v71_v6 = vmax.f32 %v51_v59, %v357_v2  ;;  %v153_v8 = vadd.f32 %v137_v61, %v452_v10  ;;  %v53_v12 = vmul.f32 %v352_v1, %v32_v60  ;;  %v34_v61 = vld [vmem:[%s639_s0 + $0x70] sm:$0xff] }
  0x20   :  { %v244_v9 = vand.u32 2147483647, %v243_v63  ;;  %v108_v11 = vmul.f32 %v390_v15, %v89_v0  ;;  %v239_v13 = vsel %vm497_vm6, %v238_v4, %v457_v14  ;;  %v72_v18 = vmax.f32 %v52_v7, %v357_v2 }
  0x21   :  { %v109_v16 = vmul.f32 %v390_v15, %v90_v5  ;;  %v91_v17 = vmin.f32 %v71_v6, %v362_v3  ;;  %169 = vst [vmem:[%s644_s5 + $0x28] sm:$0xff] %v153_v8  ;;  %v138_v10 = vsub.f32 %v457_v14, %v239_v13  ;;  %v73_v35 = vmax.f32 %v53_v12, %v357_v2 }
  0x22   :  { %v246_v19 = vor.u32 %v245_v55, %v244_v9  ;;  %v248_v20 = vand.u32 2147483647, %v108_v11  ;;  %v250_v21 = vcvt.f32.s32 %v108_v11  ;;  %v253_v22 = vand.u32 2147483648, %v108_v11  ;;  %v35_v9 = vld [vmem:[%s639_s0 + $0x78] sm:$0xff] }
  0x23   :  { %v256_v23 = vand.u32 2147483647, %v109_v16  ;;  %v258_v24 = vcvt.f32.s32 %v109_v16  ;;  %v154_v26 = vadd.f32 %v138_v10, %v457_v14  ;;  %v261_v29 = vand.u32 2147483648, %v109_v16 }
  0x24   :  { %v247_v27 = vsel %vm528_vm7, %v246_v19, %v107_v47  ;;  %v251_v28 = vcvt.s32.f32 %v250_v21  ;;  %vm555_vm8 = vcmp.lt.f32.partialorder %v248_v20, 8388608.0  ;;  %v110_v32 = vmul.f32 %v390_v15, %v91_v17 }
  0x25   :  { %v139_v30 = vsub.f32 %v107_v47, %v247_v27  ;;  %v259_v33 = vcvt.s32.f32 %v258_v24  ;;  %170 = vst [vmem:[%s644_s5 + $0x30] sm:$0xff] %v154_v26  ;;  %v92_v14 = vmin.f32 %v72_v18, %v362_v3  ;;  %v54_v36 = vmul.f32 %v352_v1, %v33_v25 }
  0x26   :  { %v252_v34 = vand.u32 2147483647, %v251_v28  ;;  %v264_v42 = vand.u32 2147483647, %v110_v32  ;;  %v266_v37 = vcvt.f32.s32 %v110_v32  ;;  %vm566_vm9 = vcmp.lt.f32.partialorder %v256_v23, 8388608.0 }
  0x27   :  { %v155_v40 = vadd.f32 %v139_v30, %v107_v47  ;;  %v260_v41 = vand.u32 2147483647, %v259_v33  ;;  %v111_v46 = vmul.f32 %v390_v15, %v92_v14  ;;  %v93_v48 = vmin.f32 %v73_v35, %v362_v3 }
  0x28   :  { %v254_v44 = vor.u32 %v253_v22, %v252_v34  ;;  %v267_v50 = vcvt.s32.f32 %v266_v37  ;;  %v269_v51 = vand.u32 2147483648, %v110_v32  ;;  %v74_v47 = vmax.f32 %v54_v36, %v357_v2 }
  0x29   :  { %171 = vst [vmem:[%s644_s5 + $0x38] sm:$0xff] %v155_v40  ;;  %v262_v49 = vor.u32 %v261_v29, %v260_v41  ;;  %vm578_vm10 = vcmp.lt.f32.partialorder %v264_v42, 8388608.0  ;;  %v272_v38 = vand.u32 2147483647, %v111_v46  ;;  %v274_v54 = vcvt.f32.s32 %v111_v46 }
  0x2a   :  { %v255_v52 = vsel %vm555_vm8, %v254_v44, %v108_v11  ;;  %v268_v56 = vand.u32 2147483647, %v267_v50  ;;  %v112_v43 = vmul.f32 %v390_v15, %v93_v48  ;;  %v277_v59 = vand.u32 2147483648, %v111_v46 }
  0x2b   :  { %v140_v55 = vsub.f32 %v108_v11, %v255_v52  ;;  %v263_v39 = vsel %vm566_vm9, %v262_v49, %v109_v16  ;;  %v275_v58 = vcvt.s32.f32 %v274_v54  ;;  %v94_v60 = vmin.f32 %v74_v47, %v362_v3 }
  0x2c   :  { %v141_v57 = vsub.f32 %v109_v16, %v263_v39  ;;  %v270_v63 = vor.u32 %v269_v51, %v268_v56  ;;  %v280_v0 = vand.u32 2147483647, %v112_v43  ;;  %v282_v4 = vcvt.f32.s32 %v112_v43 }
  0x2d   :  { %v156_v62 = vadd.f32 %v140_v55, %v108_v11  ;;  %vm589_vm11 = vcmp.lt.f32.partialorder %v272_v38, 8388608.0  ;;  %v276_v7 = vand.u32 2147483647, %v275_v58  ;;  %v113_v8 = vmul.f32 %v390_v15, %v94_v60 }
  0x2e   :  { %v157_v5 = vadd.f32 %v141_v57, %v109_v16  ;;  %v271_v11 = vsel %vm578_vm10, %v270_v63, %v110_v32  ;;  %v283_v12 = vcvt.s32.f32 %v282_v4  ;;  %v285_v13 = vand.u32 2147483648, %v112_v43 }
  0x2f   :  { %172 = vst [vmem:[%s644_s5 + $0x40] sm:$0xff] %v156_v62  ;;  %v55_v16 = vmul.f32 %v352_v1, %v34_v61  ;;  %v142_v17 = vsub.f32 %v110_v32, %v271_v11  ;;  %v278_v18 = vor.u32 %v277_v59, %v276_v7  ;;  %v288_v10 = vand.u32 2147483647, %v113_v8 }
  0x30   :  { %173 = vst [vmem:[%s644_s5 + $0x48] sm:$0xff] %v157_v5  ;;  %v290_v19 = vcvt.f32.s32 %v113_v8  ;;  %vm606_vm12 = vcmp.lt.f32.partialorder %v280_v0, 8388608.0  ;;  %v284_v21 = vand.u32 2147483647, %v283_v12  ;;  %v56_v23 = vmul.f32 %v352_v1, %v35_v9 }
  0x31   :  { %v75_v22 = vmax.f32 %v55_v16, %v357_v2  ;;  %v158_v24 = vadd.f32 %v142_v17, %v110_v32  ;;  %v279_v25 = vsel %vm589_vm11, %v278_v18, %v111_v46  ;;  %v293_v27 = vand.u32 2147483648, %v113_v8 }
  0x32   :  { %v291_v26 = vcvt.s32.f32 %v290_v19  ;;  %v143_v28 = vsub.f32 %v111_v46, %v279_v25  ;;  %v286_v29 = vor.u32 %v285_v13, %v284_v21  ;;  %v76_v31 = vmax.f32 %v56_v23, %v357_v2 }
  0x33   :  { %v95_v30 = vmin.f32 %v75_v22, %v362_v3  ;;  %174 = vst [vmem:[%s644_s5 + $0x50] sm:$0xff] %v158_v24  ;;  %vm289_vm13 = vcmp.lt.f32.partialorder %v288_v10, 8388608.0 }
  0x34   :  { %v292_v33 = vand.u32 2147483647, %v291_v26  ;;  %v159_v34 = vadd.f32 %v143_v28, %v111_v46  ;;  %v287_v1 = vsel %vm606_vm12, %v286_v29, %v112_v43  ;;  %v96_v14 = vmin.f32 %v76_v31, %v362_v3 }
  0x35   :  { %v114_v32 = vmul.f32 %v390_v15, %v95_v30  ;;  %v144_v35 = vsub.f32 %v112_v43, %v287_v1 }
  0x36   :  { %v294_v36 = vor.u32 %v293_v27, %v292_v33  ;;  %175 = vst [vmem:[%s644_s5 + $0x58] sm:$0xff] %v159_v34  ;;  %v115_v40 = vmul.f32 %v390_v15, %v96_v14 }
  0x37   :  { %v298_v2 = vcvt.f32.s32 %v114_v32  ;;  %v160_v41 = vadd.f32 %v144_v35, %v112_v43  ;;  %v296_v37 = vand.u32 2147483647, %v114_v32  ;;  %v301_v46 = vand.u32 2147483648, %v114_v32 }
  0x38   :  { %v295_v42 = vsel %vm289_vm13, %v294_v36, %v113_v8  ;;  %v306_v3 = vcvt.f32.s32 %v115_v40  ;;  %v304_v50 = vand.u32 2147483647, %v115_v40  ;;  %v309_v47 = vand.u32 2147483648, %v115_v40 }
  0x39   :  { %v145_v44 = vsub.f32 %v113_v8, %v295_v42  ;;  %v299_v45 = vcvt.s32.f32 %v298_v2  ;;  %176 = vst [vmem:[%s644_s5 + $0x60] sm:$0xff] %v160_v41  ;;  %vm297_vm14 = vcmp.lt.f32.partialorder %v296_v37, 8388608.0 }
  0x3a   :  { %v307_v51 = vcvt.s32.f32 %v306_v3  ;;  %vm305_vm15 = vcmp.lt.f32.partialorder %v304_v50, 8388608.0 }
  0x3b   :  { %v161_v48 = vadd.f32 %v145_v44, %v113_v8  ;;  %v300_v49 = vand.u32 2147483647, %v299_v45 }
  0x3c   :  { %v308_v52 = vand.u32 2147483647, %v307_v51 }
  0x3d   :  { %177 = vst [vmem:[%s644_s5 + $0x68] sm:$0xff] %v161_v48  ;;  %v302_v15 = vor.u32 %v301_v46, %v300_v49 }
  0x3e   :  { %v310_v54 = vor.u32 %v309_v47, %v308_v52 }
  0x3f   :  { %v303_v53 = vsel %vm297_vm14, %v302_v15, %v114_v32 }
  0x40   :  { %v146_v38 = vsub.f32 %v114_v32, %v303_v53  ;;  %v311_v39 = vsel %vm305_vm15, %v310_v54, %v115_v40 }
  0x41   :  { %v147_v56 = vsub.f32 %v115_v40, %v311_v39 }
  0x42   :  { %v162_v55 = vadd.f32 %v146_v38, %v114_v32 }
  0x43   :  { %v163_v43 = vadd.f32 %v147_v56, %v115_v40 }
  0x44   :  { %178 = vst [vmem:[%s644_s5 + $0x70] sm:$0xff] %v162_v55 }
  0x45   :  { %179 = vst [vmem:[%s644_s5 + $0x78] sm:$0xff] %v163_v43 }

// kernel: compression_conv_forward.3
= control target key start
LH: loop header
LB: loop body
LE: loop exit
PB: predicated region body
PF: predicated region fallthrough
CT: control target
= control target key end

     0   :  { %s1066_s1 = inlined_call_operand.vmem [shape: f32[128,128], index: 1, kind: input, shape index: {}]   ;;  %s1067_s2 = inlined_call_operand.vmem [shape: f32[1,128], index: 2, kind: input, shape index: {}]   ;;  %s1068_s0 = inlined_call_operand.vmem [shape: f32[392,128], index: 0, kind: input, shape index: {}]   ;;  %s1069_s3 = inlined_call_operand.vmem [shape: f32[392,128], index: 3, kind: output, shape index: {}]  }
   0x1   :  { %v180_v0 = vld [vmem:[%s1066_s1 + $0x78] sm:$0xff]  ;;  %v179_v1 = vld [vmem:[%s1066_s1 + $0x70] sm:$0xff]  ;;  %v178_v2 = vld [vmem:[%s1066_s1 + $0x68] sm:$0xff] }
   0x2   :  { %602 = vmatpush.msra.mxu2 %v180_v0  ;;  %603 = vmatpush.msra.mxu3 %v180_v0  ;;  %v177_v3 = vld [vmem:[%s1066_s1 + $0x60] sm:$0xff]  ;;  %v176_v4 = vld [vmem:[%s1066_s1 + $0x58] sm:$0xff]  ;;  %v175_v5 = vld [vmem:[%s1066_s1 + $0x50] sm:$0xff] }
   0x3   :  { %601 = vmatpush.msra.mxu1 %v180_v0  ;;  %181 = vmatpush.msra.mxu0 %v180_v0  ;;  %v174_v6 = vld [vmem:[%s1066_s1 + $0x48] sm:$0xff]  ;;  %v173_v7 = vld [vmem:[%s1066_s1 + $0x40] sm:$0xff]  ;;  %v172_v8 = vld [vmem:[%s1066_s1 + $0x38] sm:$0xff] }
   0x4   :  { %605 = vmatpush.msra.mxu2 %v179_v1  ;;  %606 = vmatpush.msra.mxu3 %v179_v1  ;;  %v171_v9 = vld [vmem:[%s1066_s1 + $0x30] sm:$0xff]  ;;  %v170_v10 = vld [vmem:[%s1066_s1 + $0x28] sm:$0xff]  ;;  %v169_v11 = vld [vmem:[%s1066_s1 + $0x20] sm:$0xff] }
   0x5   :  { %604 = vmatpush.msra.mxu1 %v179_v1  ;;  %182 = vmatpush.msra.mxu0 %v179_v1  ;;  %v168_v12 = vld [vmem:[%s1066_s1 + $0x18] sm:$0xff]  ;;  %v167_v13 = vld [vmem:[%s1066_s1 + $0x10] sm:$0xff]  ;;  %v166_v14 = vld [vmem:[%s1066_s1 + $0x8] sm:$0xff] }
   0x6   :  { %608 = vmatpush.msra.mxu2 %v178_v2  ;;  %609 = vmatpush.msra.mxu3 %v178_v2  ;;  %v165_v15 = vld [vmem:[%s1066_s1] sm:$0xff]  ;;  %v139_v16 = vld [vmem:[%s1068_s0 + $0xb8] sm:$0xff]  ;;  %v153_v21 = vld [vmem:[%s1068_s0 + $0x128] sm:$0xff] }
   0x7   :  { %607 = vmatpush.msra.mxu1 %v178_v2  ;;  %183 = vmatpush.msra.mxu0 %v178_v2  ;;  %v152_v17 = vld [vmem:[%s1068_s0 + $0x120] sm:$0xff]  ;;  %v127_v18 = vld [vmem:[%s1068_s0 + $0x58] sm:$0xff]  ;;  %v117_v23 = vld [vmem:[%s1068_s0 + $0x8] sm:$0xff] }
   0x8   :  { %611 = vmatpush.msra.mxu2 %v177_v3  ;;  %612 = vmatpush.msra.mxu3 %v177_v3  ;;  %v116_v19 = vld [vmem:[%s1068_s0] sm:$0xff]  ;;  %v141_v24 = vld [vmem:[%s1068_s0 + $0xc8] sm:$0xff]  ;;  %v154_v25 = vld [vmem:[%s1068_s0 + $0x130] sm:$0xff] }
   0x9   :  { %610 = vmatpush.msra.mxu1 %v177_v3  ;;  %184 = vmatpush.msra.mxu0 %v177_v3  ;;  %v140_v20 = vld [vmem:[%s1068_s0 + $0xc0] sm:$0xff]  ;;  %v129_v26 = vld [vmem:[%s1068_s0 + $0x68] sm:$0xff]  ;;  %v118_v27 = vld [vmem:[%s1068_s0 + $0x10] sm:$0xff] }
   0xa   :  { %614 = vmatpush.msra.mxu2 %v176_v4  ;;  %615 = vmatpush.msra.mxu3 %v176_v4  ;;  %v128_v22 = vld [vmem:[%s1068_s0 + $0x60] sm:$0xff]  ;;  %v142_v28 = vld [vmem:[%s1068_s0 + $0xd0] sm:$0xff]  ;;  %v155_v29 = vld [vmem:[%s1068_s0 + $0x138] sm:$0xff] }
   0xb   :  { %613 = vmatpush.msra.mxu1 %v176_v4  ;;  %185 = vmatpush.msra.mxu0 %v176_v4  ;;  %v130_v30 = vld [vmem:[%s1068_s0 + $0x70] sm:$0xff]  ;;  %v119_v31 = vld [vmem:[%s1068_s0 + $0x18] sm:$0xff]  ;;  %v156_v33 = vld [vmem:[%s1068_s0 + $0x140] sm:$0xff] }
   0xc   :  { %617 = vmatpush.msra.mxu2 %v175_v5  ;;  %618 = vmatpush.msra.mxu3 %v175_v5  ;;  %v143_v32 = vld [vmem:[%s1068_s0 + $0xd8] sm:$0xff]  ;;  %v120_v35 = vld [vmem:[%s1068_s0 + $0x20] sm:$0xff]  ;;  %v157_v37 = vld [vmem:[%s1068_s0 + $0x148] sm:$0xff] }
   0xd   :  { %616 = vmatpush.msra.mxu1 %v175_v5  ;;  %186 = vmatpush.msra.mxu0 %v175_v5  ;;  %v131_v34 = vld [vmem:[%s1068_s0 + $0x78] sm:$0xff]  ;;  %v144_v36 = vld [vmem:[%s1068_s0 + $0xe0] sm:$0xff]  ;;  %v121_v39 = vld [vmem:[%s1068_s0 + $0x28] sm:$0xff] }
   0xe   :  { %620 = vmatpush.msra.mxu2 %v174_v6  ;;  %621 = vmatpush.msra.mxu3 %v174_v6  ;;  %v132_v38 = vld [vmem:[%s1068_s0 + $0x80] sm:$0xff]  ;;  %v145_v40 = vld [vmem:[%s1068_s0 + $0xe8] sm:$0xff]  ;;  %v158_v41 = vld [vmem:[%s1068_s0 + $0x150] sm:$0xff] }
   0xf   :  { %619 = vmatpush.msra.mxu1 %v174_v6  ;;  %187 = vmatpush.msra.mxu0 %v174_v6  ;;  %v133_v42 = vld [vmem:[%s1068_s0 + $0x88] sm:$0xff]  ;;  %v122_v43 = vld [vmem:[%s1068_s0 + $0x30] sm:$0xff]  ;;  %v159_v45 = vld [vmem:[%s1068_s0 + $0x158] sm:$0xff] }
  0x10   :  { %623 = vmatpush.msra.mxu2 %v173_v7  ;;  %624 = vmatpush.msra.mxu3 %v173_v7  ;;  %v146_v44 = vld [vmem:[%s1068_s0 + $0xf0] sm:$0xff]  ;;  %v123_v47 = vld [vmem:[%s1068_s0 + $0x38] sm:$0xff]  ;;  %v160_v49 = vld [vmem:[%s1068_s0 + $0x160] sm:$0xff] }
  0x11   :  { %622 = vmatpush.msra.mxu1 %v173_v7  ;;  %188 = vmatpush.msra.mxu0 %v173_v7  ;;  %v134_v46 = vld [vmem:[%s1068_s0 + $0x90] sm:$0xff]  ;;  %v147_v48 = vld [vmem:[%s1068_s0 + $0xf8] sm:$0xff]  ;;  %v124_v51 = vld [vmem:[%s1068_s0 + $0x40] sm:$0xff] }
  0x12   :  { %626 = vmatpush.msra.mxu2 %v172_v8  ;;  %627 = vmatpush.msra.mxu3 %v172_v8  ;;  %v135_v50 = vld [vmem:[%s1068_s0 + $0x98] sm:$0xff]  ;;  %v148_v52 = vld [vmem:[%s1068_s0 + $0x100] sm:$0xff]  ;;  %v161_v53 = vld [vmem:[%s1068_s0 + $0x168] sm:$0xff] }
  0x13   :  { %625 = vmatpush.msra.mxu1 %v172_v8  ;;  %189 = vmatpush.msra.mxu0 %v172_v8  ;;  %v136_v54 = vld [vmem:[%s1068_s0 + $0xa0] sm:$0xff]  ;;  %v125_v55 = vld [vmem:[%s1068_s0 + $0x48] sm:$0xff]  ;;  %v162_v57 = vld [vmem:[%s1068_s0 + $0x170] sm:$0xff] }
  0x14   :  { %629 = vmatpush.msra.mxu2 %v171_v9  ;;  %630 = vmatpush.msra.mxu3 %v171_v9  ;;  %v149_v56 = vld [vmem:[%s1068_s0 + $0x108] sm:$0xff]  ;;  %v126_v59 = vld [vmem:[%s1068_s0 + $0x50] sm:$0xff]  ;;  %v163_v61 = vld [vmem:[%s1068_s0 + $0x178] sm:$0xff] }
  0x15   :  { %628 = vmatpush.msra.mxu1 %v171_v9  ;;  %190 = vmatpush.msra.mxu0 %v171_v9  ;;  %v137_v58 = vld [vmem:[%s1068_s0 + $0xa8] sm:$0xff]  ;;  %v150_v60 = vld [vmem:[%s1068_s0 + $0x110] sm:$0xff]  ;;  %v151_v63 = vld [vmem:[%s1068_s0 + $0x118] sm:$0xff] }
  0x16   :  { %632 = vmatpush.msra.mxu2 %v170_v10  ;;  %633 = vmatpush.msra.mxu3 %v170_v10  ;;  %v138_v62 = vld [vmem:[%s1068_s0 + $0xb0] sm:$0xff]  ;;  %v164_v0 = vld [vmem:[%s1068_s0 + $0x180] sm:$0xff] }
  0x17   :  { %631 = vmatpush.msra.mxu1 %v170_v10  ;;  %191 = vmatpush.msra.mxu0 %v170_v10  ;;  %v868_v1 = vld [vmem:[%s1067_s2] ss:$0 sm:$0xff] }
  0x18   :  { %635 = vmatpush.msra.mxu2 %v169_v11  ;;  %636 = vmatpush.msra.mxu3 %v169_v11 }
  0x19   :  { %634 = vmatpush.msra.mxu1 %v169_v11  ;;  %192 = vmatpush.msra.mxu0 %v169_v11 }
  0x1a   :  { %638 = vmatpush.msra.mxu2 %v168_v12  ;;  %639 = vmatpush.msra.mxu3 %v168_v12 }
  0x1b   :  { %637 = vmatpush.msra.mxu1 %v168_v12  ;;  %193 = vmatpush.msra.mxu0 %v168_v12 }
  0x1c   :  { %641 = vmatpush.msra.mxu2 %v167_v13  ;;  %642 = vmatpush.msra.mxu3 %v167_v13 }
  0x1d   :  { %640 = vmatpush.msra.mxu1 %v167_v13  ;;  %194 = vmatpush.msra.mxu0 %v167_v13 }
  0x1e   :  { %644 = vmatpush.msra.mxu2 %v166_v14  ;;  %645 = vmatpush.msra.mxu3 %v166_v14 }
  0x1f   :  { %643 = vmatpush.msra.mxu1 %v166_v14  ;;  %195 = vmatpush.msra.mxu0 %v166_v14 }
  0x20   :  { %647 = vmatpush.msra.mxu2 %v165_v15  ;;  %648 = vmatpush.msra.mxu3 %v165_v15 }
  0x21   :  { %266 = vmatmul.f32.vlgmr.msra.gmra.mxu2 %v139_v16  ;;  %305 = vmatmul.f32.vlgmr.msra.gmra.mxu3 %v152_v17 }
  0x22   :  { %646 = vmatpush.msra.mxu1 %v165_v15  ;;  %196 = vmatpush.msra.mxu0 %v165_v15 }
  0x23   :  { %230 = vmatmul.f32.vlgmr.msra.gmra.mxu1 %v127_v18  ;;  %197 = vmatmul.f32.vlgmr.msra.gmra.mxu0 %v116_v19 }
  0x29   :  { %269 = vmatmul.f32.gmra.mxu2 %v140_v20  ;;  %308 = vmatmul.f32.gmra.mxu3 %v153_v21 }
  0x2b   :  { %233 = vmatmul.f32.gmra.mxu1 %v128_v22  ;;  %200 = vmatmul.f32.gmra.mxu0 %v117_v23 }
  0x31   :  { %272 = vmatmul.f32.gmra.mxu2 %v141_v24  ;;  %311 = vmatmul.f32.gmra.mxu3 %v154_v25 }
  0x33   :  { %236 = vmatmul.f32.gmra.mxu1 %v129_v26  ;;  %203 = vmatmul.f32.gmra.mxu0 %v118_v27 }
  0x39   :  { %275 = vmatmul.f32.gmra.mxu2 %v142_v28  ;;  %314 = vmatmul.f32.gmra.mxu3 %v155_v29 }
  0x3b   :  { %239 = vmatmul.f32.gmra.mxu1 %v130_v30  ;;  %206 = vmatmul.f32.gmra.mxu0 %v119_v31 }
  0x41   :  { %278 = vmatmul.f32.gmra.mxu2 %v143_v32  ;;  %317 = vmatmul.f32.gmra.mxu3 %v156_v33 }
  0x43   :  { %242 = vmatmul.f32.gmra.mxu1 %v131_v34  ;;  %209 = vmatmul.f32.gmra.mxu0 %v120_v35 }
  0x49   :  { %281 = vmatmul.f32.gmra.mxu2 %v144_v36  ;;  %320 = vmatmul.f32.gmra.mxu3 %v157_v37 }
  0x4b   :  { %245 = vmatmul.f32.gmra.mxu1 %v132_v38  ;;  %212 = vmatmul.f32.gmra.mxu0 %v121_v39 }
  0x51   :  { %284 = vmatmul.f32.gmra.mxu2 %v145_v40  ;;  %323 = vmatmul.f32.gmra.mxu3 %v158_v41 }
  0x53   :  { %248 = vmatmul.f32.gmra.mxu1 %v133_v42  ;;  %215 = vmatmul.f32.gmra.mxu0 %v122_v43 }
  0x59   :  { %287 = vmatmul.f32.gmra.mxu2 %v146_v44  ;;  %326 = vmatmul.f32.gmra.mxu3 %v159_v45 }
  0x5b   :  { %251 = vmatmul.f32.gmra.mxu1 %v134_v46  ;;  %218 = vmatmul.f32.gmra.mxu0 %v123_v47 }
  0x61   :  { %290 = vmatmul.f32.gmra.mxu2 %v147_v48  ;;  %329 = vmatmul.f32.gmra.mxu3 %v160_v49 }
  0x63   :  { %254 = vmatmul.f32.gmra.mxu1 %v135_v50  ;;  %221 = vmatmul.f32.gmra.mxu0 %v124_v51 }
  0x69   :  { %293 = vmatmul.f32.gmra.mxu2 %v148_v52  ;;  %332 = vmatmul.f32.gmra.mxu3 %v161_v53 }
  0x6b   :  { %257 = vmatmul.f32.gmra.mxu1 %v136_v54  ;;  %224 = vmatmul.f32.gmra.mxu0 %v125_v55 }
  0x71   :  { %296 = vmatmul.f32.gmra.mxu2 %v149_v56  ;;  %335 = vmatmul.f32.gmra.mxu3 %v162_v57 }
  0x73   :  { %260 = vmatmul.f32.gmra.mxu1 %v137_v58  ;;  %227 = vmatmul.f32.gmra.mxu0 %v126_v59 }
  0x79   :  { %299 = vmatmul.f32.gmra.mxu2 %v150_v60  ;;  %338 = vmatmul.f32.gmra.mxu3 %v163_v61 }
  0x7b   :  { %263 = vmatmul.f32.gmra.mxu1 %v138_v62 }
  0x81   :  { %302 = vmatmul.f32.gmra.mxu2 %v151_v63  ;;  %341 = vmatmul.f32.gmra.mxu3 %v164_v0 }
  0xa0   :  { %v231_v2 = vpop.f32.mrf.mxu1  ;;  %v198_v3 = vpop.f32.mrf.mxu0 }
  0xa1   :  { %v510_v4 = vadd.f32 %v868_v1, %v231_v2  ;;  %v499_v5 = vadd.f32 %v868_v1, %v198_v3 }
  0xa3   :  { %559 = vst [vmem:[%s1069_s3 + $0x58] sm:$0xff] %v510_v4 }
  0xa4   :  { %v267_v6 = vpop.f32.mrf.mxu2  ;;  %v306_v7 = vpop.f32.mrf.mxu3  ;;  %548 = vst [vmem:[%s1069_s3] sm:$0xff] %v499_v5 }
  0xa5   :  { %v522_v8 = vadd.f32 %v868_v1, %v267_v6  ;;  %v535_v9 = vadd.f32 %v868_v1, %v306_v7 }
  0xa7   :  { %571 = vst [vmem:[%s1069_s3 + $0xb8] sm:$0xff] %v522_v8 }
  0xa8   :  { %584 = vst [vmem:[%s1069_s3 + $0x120] sm:$0xff] %v535_v9  ;;  %v234_v10 = vpop.f32.mrf.mxu1  ;;  %v201_v11 = vpop.f32.mrf.mxu0 }
  0xa9   :  { %v511_v12 = vadd.f32 %v868_v1, %v234_v10  ;;  %v500_v13 = vadd.f32 %v868_v1, %v201_v11 }
  0xab   :  { %560 = vst [vmem:[%s1069_s3 + $0x60] sm:$0xff] %v511_v12 }
  0xac   :  { %v270_v14 = vpop.f32.mrf.mxu2  ;;  %v309_v15 = vpop.f32.mrf.mxu3  ;;  %549 = vst [vmem:[%s1069_s3 + $0x8] sm:$0xff] %v500_v13 }
  0xad   :  { %v523_v16 = vadd.f32 %v868_v1, %v270_v14  ;;  %v536_v17 = vadd.f32 %v868_v1, %v309_v15 }
  0xaf   :  { %572 = vst [vmem:[%s1069_s3 + $0xc0] sm:$0xff] %v523_v16 }
  0xb0   :  { %585 = vst [vmem:[%s1069_s3 + $0x128] sm:$0xff] %v536_v17  ;;  %v237_v18 = vpop.f32.mrf.mxu1  ;;  %v204_v19 = vpop.f32.mrf.mxu0 }
  0xb1   :  { %v512_v20 = vadd.f32 %v868_v1, %v237_v18  ;;  %v501_v21 = vadd.f32 %v868_v1, %v204_v19 }
  0xb3   :  { %561 = vst [vmem:[%s1069_s3 + $0x68] sm:$0xff] %v512_v20 }
  0xb4   :  { %v273_v22 = vpop.f32.mrf.mxu2  ;;  %v312_v23 = vpop.f32.mrf.mxu3  ;;  %550 = vst [vmem:[%s1069_s3 + $0x10] sm:$0xff] %v501_v21 }
  0xb5   :  { %v524_v24 = vadd.f32 %v868_v1, %v273_v22  ;;  %v537_v25 = vadd.f32 %v868_v1, %v312_v23 }
  0xb7   :  { %573 = vst [vmem:[%s1069_s3 + $0xc8] sm:$0xff] %v524_v24 }
  0xb8   :  { %586 = vst [vmem:[%s1069_s3 + $0x130] sm:$0xff] %v537_v25  ;;  %v240_v26 = vpop.f32.mrf.mxu1  ;;  %v207_v27 = vpop.f32.mrf.mxu0 }
  0xb9   :  { %v513_v28 = vadd.f32 %v868_v1, %v240_v26  ;;  %v502_v29 = vadd.f32 %v868_v1, %v207_v27 }
  0xbb   :  { %562 = vst [vmem:[%s1069_s3 + $0x70] sm:$0xff] %v513_v28 }
  0xbc   :  { %v276_v30 = vpop.f32.mrf.mxu2  ;;  %v315_v31 = vpop.f32.mrf.mxu3  ;;  %551 = vst [vmem:[%s1069_s3 + $0x18] sm:$0xff] %v502_v29 }
  0xbd   :  { %v525_v32 = vadd.f32 %v868_v1, %v276_v30  ;;  %v538_v33 = vadd.f32 %v868_v1, %v315_v31 }
  0xbf   :  { %574 = vst [vmem:[%s1069_s3 + $0xd0] sm:$0xff] %v525_v32 }
  0xc0   :  { %587 = vst [vmem:[%s1069_s3 + $0x138] sm:$0xff] %v538_v33  ;;  %v243_v34 = vpop.f32.mrf.mxu1  ;;  %v210_v35 = vpop.f32.mrf.mxu0 }
  0xc1   :  { %v514_v36 = vadd.f32 %v868_v1, %v243_v34  ;;  %v503_v37 = vadd.f32 %v868_v1, %v210_v35 }
  0xc3   :  { %563 = vst [vmem:[%s1069_s3 + $0x78] sm:$0xff] %v514_v36 }
  0xc4   :  { %v279_v38 = vpop.f32.mrf.mxu2  ;;  %v318_v39 = vpop.f32.mrf.mxu3  ;;  %552 = vst [vmem:[%s1069_s3 + $0x20] sm:$0xff] %v503_v37 }
  0xc5   :  { %v526_v40 = vadd.f32 %v868_v1, %v279_v38  ;;  %v539_v41 = vadd.f32 %v868_v1, %v318_v39 }
  0xc7   :  { %575 = vst [vmem:[%s1069_s3 + $0xd8] sm:$0xff] %v526_v40 }
  0xc8   :  { %588 = vst [vmem:[%s1069_s3 + $0x140] sm:$0xff] %v539_v41  ;;  %v246_v42 = vpop.f32.mrf.mxu1  ;;  %v213_v43 = vpop.f32.mrf.mxu0 }
  0xc9   :  { %v515_v44 = vadd.f32 %v868_v1, %v246_v42  ;;  %v504_v45 = vadd.f32 %v868_v1, %v213_v43 }
  0xcb   :  { %564 = vst [vmem:[%s1069_s3 + $0x80] sm:$0xff] %v515_v44 }
  0xcc   :  { %v282_v46 = vpop.f32.mrf.mxu2  ;;  %v321_v47 = vpop.f32.mrf.mxu3  ;;  %553 = vst [vmem:[%s1069_s3 + $0x28] sm:$0xff] %v504_v45 }
  0xcd   :  { %v527_v48 = vadd.f32 %v868_v1, %v282_v46  ;;  %v540_v49 = vadd.f32 %v868_v1, %v321_v47 }
  0xcf   :  { %576 = vst [vmem:[%s1069_s3 + $0xe0] sm:$0xff] %v527_v48 }
  0xd0   :  { %589 = vst [vmem:[%s1069_s3 + $0x148] sm:$0xff] %v540_v49  ;;  %v249_v50 = vpop.f32.mrf.mxu1  ;;  %v216_v51 = vpop.f32.mrf.mxu0 }
  0xd1   :  { %v516_v52 = vadd.f32 %v868_v1, %v249_v50  ;;  %v505_v53 = vadd.f32 %v868_v1, %v216_v51 }
  0xd3   :  { %565 = vst [vmem:[%s1069_s3 + $0x88] sm:$0xff] %v516_v52 }
  0xd4   :  { %v285_v54 = vpop.f32.mrf.mxu2  ;;  %v324_v55 = vpop.f32.mrf.mxu3  ;;  %554 = vst [vmem:[%s1069_s3 + $0x30] sm:$0xff] %v505_v53 }
  0xd5   :  { %v528_v56 = vadd.f32 %v868_v1, %v285_v54  ;;  %v541_v57 = vadd.f32 %v868_v1, %v324_v55 }
  0xd7   :  { %577 = vst [vmem:[%s1069_s3 + $0xe8] sm:$0xff] %v528_v56 }
  0xd8   :  { %590 = vst [vmem:[%s1069_s3 + $0x150] sm:$0xff] %v541_v57  ;;  %v252_v58 = vpop.f32.mrf.mxu1  ;;  %v219_v59 = vpop.f32.mrf.mxu0 }
  0xd9   :  { %v517_v60 = vadd.f32 %v868_v1, %v252_v58  ;;  %v506_v61 = vadd.f32 %v868_v1, %v219_v59 }
  0xdb   :  { %566 = vst [vmem:[%s1069_s3 + $0x90] sm:$0xff] %v517_v60 }
  0xdc   :  { %v288_v62 = vpop.f32.mrf.mxu2  ;;  %v327_v63 = vpop.f32.mrf.mxu3  ;;  %555 = vst [vmem:[%s1069_s3 + $0x38] sm:$0xff] %v506_v61 }
  0xdd   :  { %v529_v0 = vadd.f32 %v868_v1, %v288_v62  ;;  %v542_v2 = vadd.f32 %v868_v1, %v327_v63 }
  0xdf   :  { %578 = vst [vmem:[%s1069_s3 + $0xf0] sm:$0xff] %v529_v0 }
  0xe0   :  { %591 = vst [vmem:[%s1069_s3 + $0x158] sm:$0xff] %v542_v2  ;;  %v255_v3 = vpop.f32.mrf.mxu1  ;;  %v222_v4 = vpop.f32.mrf.mxu0 }
  0xe1   :  { %v518_v5 = vadd.f32 %v868_v1, %v255_v3  ;;  %v507_v6 = vadd.f32 %v868_v1, %v222_v4 }
  0xe3   :  { %567 = vst [vmem:[%s1069_s3 + $0x98] sm:$0xff] %v518_v5 }
  0xe4   :  { %v291_v7 = vpop.f32.mrf.mxu2  ;;  %v330_v8 = vpop.f32.mrf.mxu3  ;;  %556 = vst [vmem:[%s1069_s3 + $0x40] sm:$0xff] %v507_v6 }
  0xe5   :  { %v530_v9 = vadd.f32 %v868_v1, %v291_v7  ;;  %v543_v10 = vadd.f32 %v868_v1, %v330_v8 }
  0xe7   :  { %579 = vst [vmem:[%s1069_s3 + $0xf8] sm:$0xff] %v530_v9 }
  0xe8   :  { %592 = vst [vmem:[%s1069_s3 + $0x160] sm:$0xff] %v543_v10  ;;  %v258_v11 = vpop.f32.mrf.mxu1  ;;  %v225_v12 = vpop.f32.mrf.mxu0 }
  0xe9   :  { %v519_v13 = vadd.f32 %v868_v1, %v258_v11  ;;  %v508_v14 = vadd.f32 %v868_v1, %v225_v12 }
  0xeb   :  { %568 = vst [vmem:[%s1069_s3 + $0xa0] sm:$0xff] %v519_v13 }
  0xec   :  { %v294_v15 = vpop.f32.mrf.mxu2  ;;  %v333_v16 = vpop.f32.mrf.mxu3  ;;  %557 = vst [vmem:[%s1069_s3 + $0x48] sm:$0xff] %v508_v14 }
  0xed   :  { %v531_v17 = vadd.f32 %v868_v1, %v294_v15  ;;  %v544_v18 = vadd.f32 %v868_v1, %v333_v16 }
  0xef   :  { %580 = vst [vmem:[%s1069_s3 + $0x100] sm:$0xff] %v531_v17 }
  0xf0   :  { %593 = vst [vmem:[%s1069_s3 + $0x168] sm:$0xff] %v544_v18  ;;  %v261_v19 = vpop.f32.mrf.mxu1  ;;  %v228_v20 = vpop.f32.mrf.mxu0 }
  0xf1   :  { %v520_v21 = vadd.f32 %v868_v1, %v261_v19  ;;  %v509_v22 = vadd.f32 %v868_v1, %v228_v20 }
  0xf3   :  { %569 = vst [vmem:[%s1069_s3 + $0xa8] sm:$0xff] %v520_v21 }
  0xf4   :  { %v297_v23 = vpop.f32.mrf.mxu2  ;;  %v336_v24 = vpop.f32.mrf.mxu3  ;;  %558 = vst [vmem:[%s1069_s3 + $0x50] sm:$0xff] %v509_v22 }
  0xf5   :  { %v532_v25 = vadd.f32 %v868_v1, %v297_v23  ;;  %v545_v26 = vadd.f32 %v868_v1, %v336_v24 }
  0xf7   :  { %581 = vst [vmem:[%s1069_s3 + $0x108] sm:$0xff] %v532_v25 }
  0xf8   :  { %594 = vst [vmem:[%s1069_s3 + $0x170] sm:$0xff] %v545_v26  ;;  %v264_v27 = vpop.f32.mrf.mxu1 }
  0xf9   :  { %v521_v28 = vadd.f32 %v868_v1, %v264_v27 }
  0xfb   :  { %570 = vst [vmem:[%s1069_s3 + $0xb0] sm:$0xff] %v521_v28 }
  0xfc   :  { %v300_v29 = vpop.f32.mrf.mxu2  ;;  %v339_v30 = vpop.f32.mrf.mxu3 }
  0xfd   :  { %v533_v31 = vadd.f32 %v868_v1, %v300_v29  ;;  %v546_v32 = vadd.f32 %v868_v1, %v339_v30 }
  0xff   :  { %582 = vst [vmem:[%s1069_s3 + $0x110] sm:$0xff] %v533_v31 }
 0x100   :  { %595 = vst [vmem:[%s1069_s3 + $0x178] sm:$0xff] %v546_v32 }
 0x104   :  { %v303_v33 = vpop.f32.mrf.mxu2  ;;  %v342_v34 = vpop.f32.mrf.mxu3 }
 0x105   :  { %v534_v35 = vadd.f32 %v868_v1, %v303_v33  ;;  %v547_v36 = vadd.f32 %v868_v1, %v342_v34 }
 0x107   :  { %583 = vst [vmem:[%s1069_s3 + $0x118] sm:$0xff] %v534_v35 }
 0x108   :  { %596 = vst [vmem:[%s1069_s3 + $0x180] sm:$0xff] %v547_v36 }

</bundles_post_ra>
